<compile_context>
chip_gen: v7x
topology: tpu7x:2x2x1
jax: 0.10.0
libtpu: 0.0.40
codegen_flags: <defaults>
</compile_context>

<pallas_src>
import jax
import jax.numpy as jnp
from jax.experimental import pallas as pl
from jax.experimental.pallas import tpu as pltpu

TM_MAX = 512  # batch tile; x tile is only TM*obs_dim*4 bytes, so this is comfortably VMEM-safe


def _round_up(n, m):
    return ((n + m - 1) // m) * m


def _value_net_kernel(x_ref, w1_ref, b1_ref, w2_ref, b2_ref, w3r_ref, b3_ref, o_ref):
    # fc1: bf16 operands into the MXU, f32 accumulation; bias add + tanh in f32.
    h1 = jnp.tanh(
        jnp.dot(x_ref[...].astype(jnp.bfloat16), w1_ref[...],
                preferred_element_type=jnp.float32)
        + b1_ref[...]
    )
    # fc2: same bf16-MXU / f32-elementwise split.
    h2 = jnp.tanh(
        jnp.dot(h1.astype(jnp.bfloat16), w2_ref[...],
                preferred_element_type=jnp.float32)
        + b2_ref[...]
    )
    # value head (64 -> 1): an N=1 matmul wastes a full MXU pass for one useful column,
    # so do it on the otherwise-idle VPU/XLU as multiply + lane reduction.
    v = jnp.sum(h2 * w3r_ref[...], axis=-1, keepdims=True) + b3_ref[...]
    o_ref[...] = v.astype(o_ref.dtype)


def value_net_forward(x, params):
    """Full Value_net forward pass in a single batch-tiled fused Pallas kernel."""
    if x.ndim < 2:
        x = x[jnp.newaxis, :]  # mirrors `x = x[np.newaxis, :]` in the torch module
    x = x.astype(jnp.float32)
    w1, b1, w2, b2, w3, b3 = params
    B, obs_dim = x.shape
    hidden = w1.shape[1]

    # Batch tile size: large enough to amortize per-step overhead, multiple of 8 (sublanes).
    tm = min(TM_MAX, _round_up(B, 8))
    b_pad = _round_up(B, tm)
    if b_pad != B:
        # zero-pad the tail tile; padded rows are sliced off the output below, so no leakage.
        x = jnp.pad(x, ((0, b_pad - B), (0, 0)))

    # bf16 operands for the two MXU matmuls (accumulation stays f32 in-kernel).
    w1_bf = w1.astype(jnp.bfloat16)
    w2_bf = w2.astype(jnp.bfloat16)
    w3_row = w3.reshape(1, hidden).astype(jnp.float32)  # value-head weights as a row for the VPU reduce

    grid = (b_pad // tm,)

    cost = pl.CostEstimate(
        flops=2 * b_pad * (obs_dim * hidden + hidden * hidden + hidden),
        transcendentals=2 * b_pad * hidden,
        bytes_accessed=(b_pad * obs_dim * 4 + b_pad * 4
                        + w1_bf.size * 2 + w2_bf.size * 2
                        + (b1.size + b2.size + w3_row.size + b3.size) * 4),
    )

    const = lambda i: (0, 0)  # constant block index -> weights stay VMEM-resident, single DMA
    out = pl.pallas_call(
        _value_net_kernel,
        out_shape=jax.ShapeDtypeStruct((b_pad, 1), jnp.float32),
        grid=grid,
        in_specs=[
            pl.BlockSpec((tm, obs_dim), lambda i: (i, 0)),   # x: streams per batch tile
            pl.BlockSpec((obs_dim, hidden), const),          # w1 (bf16)
            pl.BlockSpec((1, hidden), const),                # b1 (f32)
            pl.BlockSpec((hidden, hidden), const),           # w2 (bf16)
            pl.BlockSpec((1, hidden), const),                # b2 (f32)
            pl.BlockSpec((1, hidden), const),                # w3 as a row (f32)
            pl.BlockSpec((1, 1), const),                     # b3 (f32)
        ],
        out_specs=pl.BlockSpec((tm, 1), lambda i: (i, 0)),
        compiler_params=pltpu.CompilerParams(
            dimension_semantics=("parallel",),  # batch tiles are independent -> shard across TCs on v7x
        ),
        cost_estimate=cost,
    )(x, w1_bf, b1, w2_bf, b2, w3_row, b3)

    return out[:B]


def init_value_net_params(key, obs_dim, hidden=64):
    """Deterministic init mimicking PyTorch nn.Linear defaults (uniform +/- 1/sqrt(fan_in)).
    Value head weights scaled by 0.1, bias zeroed, as in Value_net.__init__."""
    k1, k2, k3, k4, k5 = jax.random.split(key, 5)

    def uniform(k, shape, fan_in):
        bound = 1.0 / jnp.sqrt(jnp.float32(fan_in))
        return jax.random.uniform(k, shape, jnp.float32, -bound, bound)

    w1 = uniform(k1, (obs_dim, hidden), obs_dim)
    b1 = uniform(k2, (1, hidden), obs_dim)
    w2 = uniform(k3, (hidden, hidden), hidden)
    b2 = uniform(k4, (1, hidden), hidden)
    w3 = uniform(k5, (hidden, 1), hidden) * 0.1   # self.v.weight.data.mul_(0.1)
    b3 = jnp.zeros((1, 1), jnp.float32)           # self.v.bias.data.zero_()
    return (w1, b1, w2, b2, w3, b3)


def value_net_ref(x, params):
    """Pure-JAX f32 reference for correctness checking."""
    if x.ndim < 2:
        x = x[jnp.newaxis, :]
    w1, b1, w2, b2, w3, b3 = params
    h1 = jnp.tanh(x @ w1 + b1)
    h2 = jnp.tanh(h1 @ w2 + b2)
    return h2 @ w3 + b3


if __name__ == "__main__":
    key = jax.random.PRNGKey(0)
    obs_dim = 32
    batch = 8

    pkey, xkey = jax.random.split(key)
    params = init_value_net_params(pkey, obs_dim)
    x = jax.random.normal(xkey, (batch, obs_dim), jnp.float32)

    out = value_net_forward(x, params)
    jax.block_until_ready(out)
    ref = value_net_ref(x, params)
    assert out.shape == (batch, 1), out.shape
    # bf16 MXU operands -> loosened tolerance vs the f32 reference.
    assert jnp.allclose(out, ref, atol=2e-2, rtol=2e-2), "mismatch vs reference"

    # single-observation path (mirrors the np.newaxis branch of the torch module)
    out1 = value_net_forward(x[0], params)
    jax.block_until_ready(out1)
    assert out1.shape == (1, 1), out1.shape
    assert jnp.allclose(out1, ref[:1], atol=2e-2, rtol=2e-2), "mismatch on 1-D input path"

    print("KERNEL_OK")
</pallas_src>

<mosaic_0001>
module attributes {stable_mosaic.version = 11 : i64} {
  func.func @_value_net_kernel(%arg0: i32, %arg1: memref<8x32xf32, #tpu.memory_space<vmem>>, %arg2: memref<32x64xbf16, #tpu.memory_space<vmem>>, %arg3: memref<1x64xf32, #tpu.memory_space<vmem>>, %arg4: memref<64x64xbf16, #tpu.memory_space<vmem>>, %arg5: memref<1x64xf32, #tpu.memory_space<vmem>>, %arg6: memref<1x64xf32, #tpu.memory_space<vmem>>, %arg7: memref<1x1xf32, #tpu.memory_space<vmem>>, %arg8: memref<8x1xf32, #tpu.memory_space<vmem>>) attributes {dimension_semantics = [#tpu.dimension_semantics<parallel>], iteration_bounds = array<i64: 1>, scalar_prefetch = 0 : i64, scratch_operands = 0 : i64, tpu.core_type = #tpu.core_type<tc>, window_params = [{transform_indices = @transform_0, window_bounds = array<i64: 8, 32>}, {pipeline_mode = #tpu.pipeline_mode<synchronous>, transform_indices = @transform_1, window_bounds = array<i64: 32, 64>}, {pipeline_mode = #tpu.pipeline_mode<synchronous>, transform_indices = @transform_2, window_bounds = array<i64: 1, 64>}, {pipeline_mode = #tpu.pipeline_mode<synchronous>, transform_indices = @transform_3, window_bounds = array<i64: 64, 64>}, {pipeline_mode = #tpu.pipeline_mode<synchronous>, transform_indices = @transform_4, window_bounds = array<i64: 1, 64>}, {pipeline_mode = #tpu.pipeline_mode<synchronous>, transform_indices = @transform_5, window_bounds = array<i64: 1, 64>}, {pipeline_mode = #tpu.pipeline_mode<synchronous>, transform_indices = @transform_6, window_bounds = array<i64: 1, 1>}, {transform_indices = @transform_7, window_bounds = array<i64: 8, 1>}]} {
    %c0 = arith.constant 0 : index
    %c0_0 = arith.constant 0 : index
    %0 = vector.load %arg1[%c0, %c0_0] : memref<8x32xf32, #tpu.memory_space<vmem>>, vector<8x32xf32>
    %1 = arith.truncf %0 : vector<8x32xf32> to vector<8x32xbf16>
    %c0_1 = arith.constant 0 : index
    %c0_2 = arith.constant 0 : index
    %2 = vector.load %arg2[%c0_1, %c0_2] : memref<32x64xbf16, #tpu.memory_space<vmem>>, vector<32x64xbf16>
    %cst = arith.constant dense<0.000000e+00> : vector<8x64xf32>
    %3 = tpu.matmul %1, %2, %cst {dimension_numbers = #tpu.dot_dimension_numbers<[1], [0], [0], [1], [0, 0, 1, 1], [], []>} : vector<8x32xbf16>, vector<32x64xbf16>, vector<8x64xf32> -> vector<8x64xf32>
    %c0_3 = arith.constant 0 : index
    %c0_4 = arith.constant 0 : index
    %4 = vector.load %arg3[%c0_3, %c0_4] : memref<1x64xf32, #tpu.memory_space<vmem>>, vector<1x64xf32>
    %5 = vector.broadcast %4 : vector<1x64xf32> to vector<8x64xf32>
    %6 = arith.addf %3, %5 : vector<8x64xf32>
    %7 = math.tanh %6 : vector<8x64xf32>
    %8 = arith.truncf %7 : vector<8x64xf32> to vector<8x64xbf16>
    %c0_5 = arith.constant 0 : index
    %c0_6 = arith.constant 0 : index
    %9 = vector.load %arg4[%c0_5, %c0_6] : memref<64x64xbf16, #tpu.memory_space<vmem>>, vector<64x64xbf16>
    %cst_7 = arith.constant dense<0.000000e+00> : vector<8x64xf32>
    %10 = tpu.matmul %8, %9, %cst_7 {dimension_numbers = #tpu.dot_dimension_numbers<[1], [0], [0], [1], [0, 0, 1, 1], [], []>} : vector<8x64xbf16>, vector<64x64xbf16>, vector<8x64xf32> -> vector<8x64xf32>
    %c0_8 = arith.constant 0 : index
    %c0_9 = arith.constant 0 : index
    %11 = vector.load %arg5[%c0_8, %c0_9] : memref<1x64xf32, #tpu.memory_space<vmem>>, vector<1x64xf32>
    %12 = vector.broadcast %11 : vector<1x64xf32> to vector<8x64xf32>
    %13 = arith.addf %10, %12 : vector<8x64xf32>
    %14 = math.tanh %13 : vector<8x64xf32>
    %c0_10 = arith.constant 0 : index
    %c0_11 = arith.constant 0 : index
    %15 = vector.load %arg6[%c0_10, %c0_11] : memref<1x64xf32, #tpu.memory_space<vmem>>, vector<1x64xf32>
    %16 = vector.broadcast %15 : vector<1x64xf32> to vector<8x64xf32>
    %17 = arith.mulf %14, %16 : vector<8x64xf32>
    %cst_12 = arith.constant dense<0.000000e+00> : vector<8xf32>
    %18 = vector.multi_reduction <add>, %17, %cst_12 [1] : vector<8x64xf32> to vector<8xf32>
    %19 = vector.shape_cast %18 : vector<8xf32> to vector<8x1xf32>
    %c0_13 = arith.constant 0 : index
    %c0_14 = arith.constant 0 : index
    %20 = vector.load %arg7[%c0_13, %c0_14] : memref<1x1xf32, #tpu.memory_space<vmem>>, vector<1x1xf32>
    %21 = vector.broadcast %20 : vector<1x1xf32> to vector<8x1xf32>
    %22 = arith.addf %19, %21 : vector<8x1xf32>
    %c0_15 = arith.constant 0 : index
    %c0_16 = arith.constant 0 : index
    %23 = vector.load %arg8[%c0_15, %c0_16] : memref<8x1xf32, #tpu.memory_space<vmem>>, vector<8x1xf32>
    tpu.vector_store %arg8[%c0_15, %c0_16], %22 {strides = array<i32>} : memref<8x1xf32, #tpu.memory_space<vmem>>, vector<8x1xf32>,
    return
  }
  func.func @transform_0(%arg0: i32) -> (i32, i32) {
    %c0_i32 = arith.constant 0 : i32
    %c0_i32_0 = arith.constant 0 : i32
    return %arg0, %c0_i32 : i32, i32
  }
  func.func @transform_1(%arg0: i32) -> (i32, i32) {
    %c0_i32 = arith.constant 0 : i32
    %c0_i32_0 = arith.constant 0 : i32
    %c0_i32_1 = arith.constant 0 : i32
    return %c0_i32, %c0_i32_0 : i32, i32
  }
  func.func @transform_2(%arg0: i32) -> (i32, i32) {
    %c0_i32 = arith.constant 0 : i32
    %c0_i32_0 = arith.constant 0 : i32
    %c0_i32_1 = arith.constant 0 : i32
    return %c0_i32, %c0_i32_0 : i32, i32
  }
  func.func @transform_3(%arg0: i32) -> (i32, i32) {
    %c0_i32 = arith.constant 0 : i32
    %c0_i32_0 = arith.constant 0 : i32
    %c0_i32_1 = arith.constant 0 : i32
    return %c0_i32, %c0_i32_0 : i32, i32
  }
  func.func @transform_4(%arg0: i32) -> (i32, i32) {
    %c0_i32 = arith.constant 0 : i32
    %c0_i32_0 = arith.constant 0 : i32
    %c0_i32_1 = arith.constant 0 : i32
    return %c0_i32, %c0_i32_0 : i32, i32
  }
  func.func @transform_5(%arg0: i32) -> (i32, i32) {
    %c0_i32 = arith.constant 0 : i32
    %c0_i32_0 = arith.constant 0 : i32
    %c0_i32_1 = arith.constant 0 : i32
    return %c0_i32, %c0_i32_0 : i32, i32
  }
  func.func @transform_6(%arg0: i32) -> (i32, i32) {
    %c0_i32 = arith.constant 0 : i32
    %c0_i32_0 = arith.constant 0 : i32
    %c0_i32_1 = arith.constant 0 : i32
    return %c0_i32, %c0_i32_0 : i32, i32
  }
  func.func @transform_7(%arg0: i32) -> (i32, i32) {
    %c0_i32 = arith.constant 0 : i32
    %c0_i32_0 = arith.constant 0 : i32
    return %arg0, %c0_i32 : i32, i32
  }
}

</mosaic_0001>

<bundles_post_ra>
// kernel: tpu_custom_call.1
= control target key start
LH: loop header
LB: loop body
LE: loop exit
PB: predicated region body
PF: predicated region fallthrough
CT: control target
= control target key end

     0   :  { %s481_s0 = inlined_call_operand.hbm [shape: f32[8,32], index: 0, kind: input, shape index: {}]   ;;  %s482_s1 = inlined_call_operand.hbm [shape: bf16[32,64], index: 1, kind: input, shape index: {}]   ;;  %s483_s2 = inlined_call_operand.vmem [shape: f32[1,64], index: 2, kind: input, shape index: {}]   ;;  %s484_s3 = inlined_call_operand.hbm [shape: bf16[64,64], index: 3, kind: input, shape index: {}]   ;;  %s485_s4 = inlined_call_operand.vmem [shape: f32[1,64], index: 4, kind: input, shape index: {}]   ;;  %s486_s5 = inlined_call_operand.vmem [shape: f32[1,64], index: 5, kind: input, shape index: {}]   ;;  %s487_s6 = inlined_call_operand.<no memory space> [shape: f32[1,1], index: 6, kind: input, shape index: {}]   ;;  %s488_s7 = inlined_call_operand.vmem [shape: f32[8,1], index: 7, kind: output, shape index: {}]  }
   0x1   :  { %v12_v0 = vstv %s487_s6 }
   0x2   :  { %13 = vst [vmem:[#allocation2] sm:$0x1] %v12_v0 }
   0x3   :  { %14 = vsyncpa [#allocation4], 0 }
   0x4   :  { %15 = vsyncpa [#allocation6], 0  ;;  %s377_s26 = smov [#allocation5]   ;;  %s307_s30 = scalar_lea.hbm %s482_s1, 256 }
   0x5   :  { %s31_s27 = sshll.u32 %s377_s26, 4  ;;  %p308_p0 = scmp.ne.s32.totalorder %s482_s1, %s307_s30  ;;  %s32_s27 = int_to_ptr.vmem [resolvable:$true] %s31_s27 }
   0x6   :  { %p311_p1 = scmp.lt.u32.totalorder %s307_s30, %s482_s1 }
   0x8   :  { %p313_p2 = pnand %p311_p1, %p308_p0 }
   0xa   :  { %316 = shalt.err (!%p313_p2)
}
   0xb   :  { %s317_s6 = scalar_lea.vmem %s32_s27, 256  ;;  %p322_p4 = scmp.lt.s32.totalorder %s32_s27, %s32_s27 }
   0xc   :  { %p318_p3 = scmp.ne.s32.totalorder %s32_s27, %s317_s6  ;;  %p323_p5 = scmp.lt.s32.totalorder %s317_s6, %s317_s6 }
   0xe   :  { %p324_p6 = por %p323_p5, %p322_p4 }
  0x10   :  { %p325_p7 = pnand %p324_p6, %p318_p3 }
  0x12   :  { %328 = shalt.err (!%p325_p7)
}
  0x13   :  { %s378_s12 = smov 64   ;;  %s379_s13 = smov 4  }
  0x14   :  { %37 = dma.hbm_to_vmem [thread:$0]  %s482_s1, 256, %s32_s27, [#allocation6], %s378_s12, %s378_s12, %s379_s13  }
  0x15   :  { %s380_s16 = smov [#allocation3]   ;;  %s381_s18 = smov [#allocation7]  }
  0x16   :  { %s22_s17 = sshll.u32 %s380_s16, 4  ;;  %s45_s19 = sshll.u32 %s381_s18, 4  ;;  %s23_s17 = int_to_ptr.vmem [resolvable:$true] %s22_s17  ;;  %s46_s19 = int_to_ptr.vmem [resolvable:$true] %s45_s19 }
  0x17   :  { %s329_s22 = scalar_lea.hbm %s481_s0, 128 }
  0x18   :  { %p330_p8 = scmp.ne.s32.totalorder %s481_s0, %s329_s22  ;;  %p333_p9 = scmp.lt.u32.totalorder %s329_s22, %s481_s0 }
  0x1a   :  { %p335_p10 = pnand %p333_p9, %p330_p8 }
  0x1c   :  { %338 = shalt.err (!%p335_p10)
}
  0x1d   :  { %s339_s1 = scalar_lea.vmem %s23_s17, 128  ;;  %p344_p12 = scmp.lt.s32.totalorder %s23_s17, %s23_s17 }
  0x1e   :  { %p340_p11 = scmp.ne.s32.totalorder %s23_s17, %s339_s1  ;;  %p345_p13 = scmp.lt.s32.totalorder %s339_s1, %s339_s1 }
  0x20   :  { %p346_p0 = por %p345_p13, %p344_p12 }
  0x22   :  { %p347_p1 = pnand %p346_p0, %p340_p11 }
  0x24   :  { %350 = shalt.err (!%p347_p1)
}
  0x25   :  { %25 = dma.hbm_to_vmem [thread:$0]  %s481_s0, 128, %s23_s17, [#allocation4]  }
  0x26   :  { %s351_s8 = scalar_lea.hbm %s484_s3, 512 }
  0x27   :  { %p352_p2 = scmp.ne.s32.totalorder %s484_s3, %s351_s8  ;;  %p355_p3 = scmp.lt.u32.totalorder %s351_s8, %s484_s3 }
  0x29   :  { %p357_p4 = pnand %p355_p3, %p352_p2 }
  0x2b   :  { %360 = shalt.err (!%p357_p4)
}
  0x2c   :  { %s361_s14 = scalar_lea.vmem %s46_s19, 512  ;;  %p366_p6 = scmp.lt.s32.totalorder %s46_s19, %s46_s19 }
  0x2d   :  { %p362_p5 = scmp.ne.s32.totalorder %s46_s19, %s361_s14  ;;  %p367_p7 = scmp.lt.s32.totalorder %s361_s14, %s361_s14 }
  0x2f   :  { %p368_p8 = por %p367_p7, %p366_p6 }
  0x31   :  { %p369_p9 = pnand %p368_p8, %p362_p5 }
  0x33   :  { %372 = shalt.err (!%p369_p9)
}
  0x34   :  { %51 = dma.hbm_to_vmem [thread:$0]  %s484_s3, 512, %s46_s19, [#allocation6], %s378_s12, %s378_s12, %s379_s13  }
  0x35   :  { %373 = dma.done.wait [#allocation4], 128  }
  0x36   :  { %374 = vsyncadd [#allocation4], 4294967168 }
  0x37   :  { %375 = dma.done.wait [#allocation6], 768  }
  0x38   :  { %376 = vsyncadd [#allocation6], 4294966528  ;;  %v382_v1 = vmov 0.0   ;;  %vm383_vm0 = vmmov 0   ;;  %v297_v2 = vld [vmem:[#allocation5] sm:$0xff]   ;;  %v298_v3 = vld [vmem:[#allocation5 + $0x8] sm:$0xff]  }
  0x39   :  { %270 = vmatprep.subr.bf16.mxu0 %v382_v1  ;;  %274 = vmatprep.mubr.msk.bf16.mxu0 %vm383_vm0, %v382_v1  ;;  %v68_v4 = vld [vmem:[#allocation3] sm:$0xff]  ;;  %vm93_vm1 = vcmask 261120   ;;  %v299_v6 = vld [vmem:[#allocation7] sm:$0xff]   ;;  %v301_v8 = vld [vmem:[#allocation7 + $0x10] sm:$0xff]   ;;  %vm178_vm2 = vcmask 523264   ;;  %vm242_vm3 = vcmask 7168  }
  0x3a   :  { %278 = vmatprep.subr.bf16.mxu1 %v382_v1  ;;  %286 = vmatprep.mubr.msk.bf16.mxu1 %vm383_vm0, %v382_v1  ;;  %v69_v5 = vpack.c.bf16 %v68_v4, %v68_v4  ;;  %v300_v7 = vld [vmem:[#allocation7 + $0x8] sm:$0xff]   ;;  %v302_v9 = vld [vmem:[#allocation7 + $0x18] sm:$0xff]   ;;  %v250_v10 = vld [vmem:[%s483_s2] ss:$0 sm:$0xff] }
  0x3b   :  { %271 = vmatpush3.bf16.msra.mxu0 %v297_v2  ;;  %279 = vmatpush3.bf16.msra.mxu1 %v299_v6  ;;  %v254_v18 = vld [vmem:[%s485_s4] ss:$0 sm:$0xff] }
  0x3c   :  { %272 = vmatprep.subr.bf16.mxu0 %v382_v1  ;;  %280 = vmatprep.subr.bf16.mxu1 %v382_v1  ;;  %v260_v24 = vld [vmem:[%s486_s5] ss:$0 sm:$0xff] }
  0x3d   :  { %v261_v28 = vld [vmem:[#allocation2] ss:$0 sm:$0xff] }
  0x3f   :  { %273 = vmatpush3.bf16.msra.mxu0 %v298_v3  ;;  %281 = vmatpush3.bf16.msra.mxu1 %v300_v7 }
  0x40   :  { %282 = vmatprep.subr.bf16.mxu1 %v382_v1 }
  0x42   :  { %275 = vmatmul.mubr.msk.bf16.vlgmr.msra.gmra.mrb[0].mxu0 %vm93_vm1, %v69_v5 }
  0x43   :  { %283 = vmatpush3.bf16.msra.mxu1 %v301_v8 }
  0x44   :  { %284 = vmatprep.subr.bf16.mxu1 %v382_v1 }
  0x47   :  { %285 = vmatpush3.bf16.msra.mxu1 %v302_v9 }
 0x115   :  { %v131_v11 = vpop.f32.mrb[0].mxu0 }
 0x116   :  { %v132_v12 = vadd.f32 %v250_v10, %v131_v11  ;;  %v276_v13 = vpop.f32.mrb[1].mxu0 }
 0x117   :  { %v134_v14 = vpop.f32.mrb[2].mxu0 }
 0x118   :  { %303 = vtanh.f32 %v132_v12  ;;  %v277_v15 = vpop.f32.mrb[3].mxu0 }
 0x122   :  { %v304_v16 = vpop.eup %303 }
 0x123   :  { %v138_v17 = vpack.c.bf16 %v304_v16, %v304_v16 }
 0x125   :  { %287 = vmatmul.mubr.msk.bf16.vlgmr.msra.gmra.mrb[0].mxu1 %vm178_vm2, %v138_v17 }
 0x1f8   :  { %v216_v19 = vpop.f32.mrb[0].mxu1 }
 0x1f9   :  { %v217_v20 = vadd.f32 %v254_v18, %v216_v19  ;;  %v288_v21 = vpop.f32.mrb[1].mxu1 }
 0x1fa   :  { %v219_v22 = vpop.f32.mrb[2].mxu1 }
 0x1fb   :  { %305 = vtanh.f32 %v217_v20  ;;  %v289_v23 = vpop.f32.mrb[3].mxu1 }
 0x205   :  { %v306_v25 = vpop.eup %305 }
 0x206   :  { %v230_v26 = vmul.f32 %v306_v25, %v260_v24 }
 0x208   :  { %v231_v27 = vsel %vm178_vm2, %v230_v26, 0.0 }
 0x209   :  { %232 = vadd.xlane.f32.xlu0 %v231_v27 }
 0x296   :  { %v233_v29 = vpop.xlane.xlu0 %232 }
 0x297   :  { %v241_v30 = vadd.f32 %v261_v28, %v233_v29 }
 0x299   :  { %243 = vst.msk [vmem:[%s488_s7] sm:$0xff] %vm242_vm3, %v241_v30 }
 0x29a   :  { %248 = vsyncpa [#allocation4], 1 }
 0x29b   :  { %249 = vsyncpa [#allocation6], 1 }

</bundles_post_ra>
